<compile_context>
chip_gen: v5e
topology: v5e:2x2
jax: 0.10.0
libtpu: 0.0.40
codegen_flags: <defaults>
</compile_context>

<pallas_src>
import functools

import jax
import jax.numpy as jnp
from jax.experimental import pallas as pl
from jax.experimental.pallas import tpu as pltpu


def _round_up(x, m):
    return (x + m - 1) // m * m


def _sublane(dtype):
    # minimum second-to-last tile granularity per dtype packing
    return {4: 8, 2: 16, 1: 32}.get(jnp.dtype(dtype).itemsize, 8)


# ---------------------------------------------------------------------------
# Fused kernel: one-hot MXU gather from the VMEM-resident extended table,
# then LayerNorm in-tile (null/dropped rows bypass LN).
# ---------------------------------------------------------------------------
def _embed_kernel(idx_ref, table_ref, w_ref, b_ref, out_ref, *, cls_num, eps):
    idx = idx_ref[...]                                   # (TB, 1) int32
    tab = table_ref[...]                                 # (cls_pad, D)
    tb = idx.shape[0]
    cls_pad = tab.shape[0]

    # Exact row gather via one-hot matmul on the MXU (lane-dense, VMEM->MXU).
    col = jax.lax.broadcasted_iota(jnp.int32, (tb, cls_pad), 1)
    onehot = (col == idx).astype(tab.dtype)              # (TB, cls_pad)
    raw = jnp.dot(onehot, tab, preferred_element_type=jnp.float32)  # (TB, D) f32

    # LayerNorm (biased variance, f32), applied only to real class rows.
    mean = jnp.mean(raw, axis=-1, keepdims=True)
    var = jnp.mean((raw - mean) ** 2, axis=-1, keepdims=True)
    ln = (raw - mean) * jax.lax.rsqrt(var + eps)
    ln = ln * w_ref[...].astype(jnp.float32) + b_ref[...].astype(jnp.float32)

    is_null = idx == cls_num                              # (TB, 1): CFG-dropped rows
    out_ref[...] = jnp.where(is_null, raw, ln).astype(out_ref.dtype)


# ---------------------------------------------------------------------------
# Wrapper matching CategoricalLabelEmbedder.forward semantics.
# ---------------------------------------------------------------------------
def categorical_label_embedder(labels,
                               emb_table,
                               ln_weight,
                               ln_bias,
                               null_emb,
                               use_drop: bool,
                               force_drop_ids=None,
                               eps: float = 1e-5,
                               tile_batch: int = None):
    cls_num, d = emb_table.shape
    out_dtype = emb_table.dtype

    # labels is None -> broadcast the raw null embedding (pure glue, no hot path)
    if labels is None:
        b = force_drop_ids.shape[0] if force_drop_ids is not None else 1
        return jnp.broadcast_to(null_emb[None, :].astype(out_dtype), (b, d))

    b = labels.shape[0]
    # clamp matches torch.clamp(labels, 0, cls_num - 1)
    labels = jnp.clip(labels.astype(jnp.int32), 0, cls_num - 1)

    if use_drop and force_drop_ids is not None:
        drop = force_drop_ids.astype(jnp.bool_)
        # Fold the CFG drop into the gather index: dropped rows fetch the raw
        # (un-normalized) null row stored at index cls_num.
        gather_idx = jnp.where(drop, jnp.int32(cls_num), labels)
    else:
        # TODO(synk): training-time Bernoulli(drop_prob) CFG dropout needs an RNG
        # key threaded in; eval mode / no force_drop_ids -> no dropout here.
        gather_idx = labels

    # dtype-aware batch tile: multiple of the sublane packing, large enough to
    # amortize grid-step overhead, capped at the padded batch.
    sub = _sublane(out_dtype)
    tb = tile_batch if tile_batch is not None else 256
    tb = max(sub, _round_up(min(tb, _round_up(b, sub)), sub))
    b_pad = _round_up(b, tb)
    if b_pad > b:
        gather_idx = jnp.pad(gather_idx, (0, b_pad - b))   # pad with valid index 0
    idx2d = gather_idx.reshape(b_pad, 1).astype(jnp.int32)

    # Extended table: [embedding rows..., raw null row, zero padding].
    # Pad classes to a multiple of 128 so the one-hot contraction dim is
    # lane-aligned (pad columns never match any index -> contribute zero).
    cls_ext = cls_num + 1
    cls_pad = _round_up(cls_ext, 128)
    ext = jnp.concatenate(
        [emb_table, null_emb.reshape(1, d).astype(out_dtype)], axis=0)
    if cls_pad > cls_ext:
        ext = jnp.pad(ext, ((0, cls_pad - cls_ext), (0, 0)))

    # Rough VMEM budget; raise the scoped limit only when needed
    # (v5e scoped default is 16 MiB; keep requests <= 48 MiB for v7x headroom).
    itemsize = jnp.dtype(out_dtype).itemsize
    est = (2 * cls_pad * d * itemsize          # table (worst-case double buffer)
           + 2 * tb * d * itemsize             # output double buffer
           + tb * cls_pad * 4                  # one-hot temporary
           + 2 * tb * d * 4                    # f32 intermediates
           + (1 << 20))
    ckw = {}
    if est > 12 * 1024 * 1024:
        ckw["vmem_limit_bytes"] = min(int(est * 1.5), 48 * 1024 * 1024)

    out = pl.pallas_call(
        functools.partial(_embed_kernel, cls_num=cls_num, eps=float(eps)),
        out_shape=jax.ShapeDtypeStruct((b_pad, d), out_dtype),
        grid_spec=pltpu.PrefetchScalarGridSpec(
            num_scalar_prefetch=0,
            grid=(b_pad // tb,),
            in_specs=[
                pl.BlockSpec((tb, 1), lambda i: (i, 0)),        # gather indices
                pl.BlockSpec((cls_pad, d), lambda i: (0, 0)),   # table (VMEM-resident)
                pl.BlockSpec((1, d), lambda i: (0, 0)),         # LN weight
                pl.BlockSpec((1, d), lambda i: (0, 0)),         # LN bias
            ],
            out_specs=pl.BlockSpec((tb, d), lambda i: (i, 0)),  # lane-dense tiles
        ),
        compiler_params=pltpu.CompilerParams(
            dimension_semantics=("parallel",), **ckw),          # tiles independent
    )(idx2d, ext, ln_weight.reshape(1, d), ln_bias.reshape(1, d))
    return out[:b]


# ---------------------------------------------------------------------------
# Pure-JAX reference (mirrors the PyTorch forward exactly: null bypasses LN).
# ---------------------------------------------------------------------------
def _reference(labels, emb_table, ln_w, ln_b, null_emb, use_drop,
               force_drop_ids, eps=1e-5):
    cls_num, d = emb_table.shape
    labels = jnp.clip(labels, 0, cls_num - 1)
    x = emb_table[labels].astype(jnp.float32)
    mean = jnp.mean(x, axis=-1, keepdims=True)
    var = jnp.mean((x - mean) ** 2, axis=-1, keepdims=True)
    y = (x - mean) * jax.lax.rsqrt(var + eps) * ln_w + ln_b
    if use_drop and force_drop_ids is not None:
        y = jnp.where((force_drop_ids != 0)[:, None],
                      null_emb[None, :].astype(jnp.float32), y)
    return y.astype(emb_table.dtype)


if __name__ == "__main__":
    key = jax.random.PRNGKey(0)
    k_emb, k_null, k_lab, k_drop = jax.random.split(key, 4)

    cls_num = 10
    lab_emb_dim = 128     # lane-dense: last dim maps onto the 128-lane axis
    batch = 20            # not a multiple of the batch tile -> exercises padding

    # nn.init.normal_(std=0.02) for embedding + null; LayerNorm default affine.
    emb_table = 0.02 * jax.random.normal(k_emb, (cls_num, lab_emb_dim), jnp.float32)
    null_emb = 0.02 * jax.random.normal(k_null, (lab_emb_dim,), jnp.float32)
    ln_weight = jnp.ones((lab_emb_dim,), jnp.float32)
    ln_bias = jnp.zeros((lab_emb_dim,), jnp.float32)

    labels = jax.random.randint(k_lab, (batch,), -1, cls_num + 2, jnp.int32)  # exercises clamp
    force_drop_ids = (jax.random.uniform(k_drop, (batch,)) < 0.3).astype(jnp.int32)

    out = categorical_label_embedder(labels, emb_table, ln_weight, ln_bias,
                                     null_emb, use_drop=True,
                                     force_drop_ids=force_drop_ids)
    out = jax.block_until_ready(out)

    ref = _reference(labels, emb_table, ln_weight, ln_bias, null_emb,
                     True, force_drop_ids)
    assert out.shape == (batch, lab_emb_dim)
    assert jnp.allclose(out, ref, atol=1e-5, rtol=1e-5), "mismatch vs reference"

    # use_drop=False path
    out_nd = categorical_label_embedder(labels, emb_table, ln_weight, ln_bias,
                                        null_emb, use_drop=False)
    out_nd = jax.block_until_ready(out_nd)
    ref_nd = _reference(labels, emb_table, ln_weight, ln_bias, null_emb,
                        False, None)
    assert jnp.allclose(out_nd, ref_nd, atol=1e-5, rtol=1e-5), "mismatch (no drop)"

    # labels=None path (wrapper glue, no Pallas call)
    out_null = categorical_label_embedder(None, emb_table, ln_weight, ln_bias,
                                          null_emb, use_drop=True,
                                          force_drop_ids=force_drop_ids)
    assert out_null.shape == (batch, lab_emb_dim)

    print("KERNEL_OK")
</pallas_src>

<mosaic_0001>
module attributes {stable_mosaic.version = 11 : i64} {
  func.func @_embed_kernel(%arg0: i32, %arg1: memref<24x1xi32, #tpu.memory_space<vmem>>, %arg2: memref<128x128xf32, #tpu.memory_space<vmem>>, %arg3: memref<1x128xf32, #tpu.memory_space<vmem>>, %arg4: memref<1x128xf32, #tpu.memory_space<vmem>>, %arg5: memref<24x128xf32, #tpu.memory_space<vmem>>) attributes {dimension_semantics = [#tpu.dimension_semantics<parallel>], iteration_bounds = array<i64: 1>, scalar_prefetch = 0 : i64, scratch_operands = 0 : i64, tpu.core_type = #tpu.core_type<tc>, window_params = [{transform_indices = @transform_0, window_bounds = array<i64: 24, 1>}, {pipeline_mode = #tpu.pipeline_mode<synchronous>, transform_indices = @transform_1, window_bounds = array<i64: 128, 128>}, {pipeline_mode = #tpu.pipeline_mode<synchronous>, transform_indices = @transform_2, window_bounds = array<i64: 1, 128>}, {pipeline_mode = #tpu.pipeline_mode<synchronous>, transform_indices = @transform_3, window_bounds = array<i64: 1, 128>}, {transform_indices = @transform_4, window_bounds = array<i64: 24, 128>}]} {
    %c0 = arith.constant 0 : index
    %c0_0 = arith.constant 0 : index
    %0 = vector.load %arg1[%c0, %c0_0] : memref<24x1xi32, #tpu.memory_space<vmem>>, vector<24x1xi32>
    %c0_1 = arith.constant 0 : index
    %c0_2 = arith.constant 0 : index
    %1 = vector.load %arg2[%c0_1, %c0_2] : memref<128x128xf32, #tpu.memory_space<vmem>>, vector<128x128xf32>
    %2 = tpu.iota {dimensions = array<i32: 1>} : vector<24x128xi32>
    %3 = vector.broadcast %0 : vector<24x1xi32> to vector<24x128xi32>
    %4 = arith.cmpi eq, %2, %3 : vector<24x128xi32>
    %5 = arith.extui %4 : vector<24x128xi1> to vector<24x128xi32>
    %6 = arith.sitofp %5 : vector<24x128xi32> to vector<24x128xf32>
    %cst = arith.constant dense<0.000000e+00> : vector<24x128xf32>
    %7 = tpu.matmul %6, %1, %cst {dimension_numbers = #tpu.dot_dimension_numbers<[1], [0], [0], [1], [0, 0, 1, 1], [], []>} : vector<24x128xf32>, vector<128x128xf32>, vector<24x128xf32> -> vector<24x128xf32>
    %cst_3 = arith.constant dense<0.000000e+00> : vector<24xf32>
    %8 = vector.multi_reduction <add>, %7, %cst_3 [1] : vector<24x128xf32> to vector<24xf32>
    %9 = vector.shape_cast %8 : vector<24xf32> to vector<24x1xf32>
    %cst_4 = arith.constant 1.280000e+02 : f32
    %10 = vector.broadcast %cst_4 : f32 to vector<24x1xf32>
    %11 = arith.divf %9, %10 : vector<24x1xf32>
    %12 = vector.broadcast %11 : vector<24x1xf32> to vector<24x128xf32>
    %13 = arith.subf %7, %12 : vector<24x128xf32>
    %14 = arith.mulf %13, %13 : vector<24x128xf32>
    %cst_5 = arith.constant dense<0.000000e+00> : vector<24xf32>
    %15 = vector.multi_reduction <add>, %14, %cst_5 [1] : vector<24x128xf32> to vector<24xf32>
    %16 = vector.shape_cast %15 : vector<24xf32> to vector<24x1xf32>
    %cst_6 = arith.constant 1.280000e+02 : f32
    %17 = vector.broadcast %cst_6 : f32 to vector<24x1xf32>
    %18 = arith.divf %16, %17 : vector<24x1xf32>
    %19 = vector.broadcast %11 : vector<24x1xf32> to vector<24x128xf32>
    %20 = arith.subf %7, %19 : vector<24x128xf32>
    %cst_7 = arith.constant 9.99999974E-6 : f32
    %21 = vector.broadcast %cst_7 : f32 to vector<24x1xf32>
    %22 = arith.addf %18, %21 : vector<24x1xf32>
    %23 = math.rsqrt %22 : vector<24x1xf32>
    %24 = vector.broadcast %23 : vector<24x1xf32> to vector<24x128xf32>
    %25 = arith.mulf %20, %24 : vector<24x128xf32>
    %c0_8 = arith.constant 0 : index
    %c0_9 = arith.constant 0 : index
    %26 = vector.load %arg3[%c0_8, %c0_9] : memref<1x128xf32, #tpu.memory_space<vmem>>, vector<1x128xf32>
    %27 = vector.broadcast %26 : vector<1x128xf32> to vector<24x128xf32>
    %28 = arith.mulf %25, %27 : vector<24x128xf32>
    %c0_10 = arith.constant 0 : index
    %c0_11 = arith.constant 0 : index
    %29 = vector.load %arg4[%c0_10, %c0_11] : memref<1x128xf32, #tpu.memory_space<vmem>>, vector<1x128xf32>
    %30 = vector.broadcast %29 : vector<1x128xf32> to vector<24x128xf32>
    %31 = arith.addf %28, %30 : vector<24x128xf32>
    %c10_i32 = arith.constant 10 : i32
    %32 = vector.broadcast %c10_i32 : i32 to vector<24x1xi32>
    %33 = arith.cmpi eq, %0, %32 : vector<24x1xi32>
    %34 = vector.shape_cast %33 : vector<24x1xi1> to vector<24x1xi1>
    %35 = vector.broadcast %34 : vector<24x1xi1> to vector<24x128xi1>
    %36 = arith.select %35, %7, %31 : vector<24x128xi1>, vector<24x128xf32>
    %c0_12 = arith.constant 0 : index
    %c0_13 = arith.constant 0 : index
    %37 = vector.load %arg5[%c0_12, %c0_13] : memref<24x128xf32, #tpu.memory_space<vmem>>, vector<24x128xf32>
    tpu.vector_store %arg5[%c0_12, %c0_13], %36 {strides = array<i32>} : memref<24x128xf32, #tpu.memory_space<vmem>>, vector<24x128xf32>,
    return
  }
  func.func @transform_0(%arg0: i32) -> (i32, i32) {
    %c0_i32 = arith.constant 0 : i32
    %c0_i32_0 = arith.constant 0 : i32
    return %arg0, %c0_i32 : i32, i32
  }
  func.func @transform_1(%arg0: i32) -> (i32, i32) {
    %c0_i32 = arith.constant 0 : i32
    %c0_i32_0 = arith.constant 0 : i32
    %c0_i32_1 = arith.constant 0 : i32
    return %c0_i32, %c0_i32_0 : i32, i32
  }
  func.func @transform_2(%arg0: i32) -> (i32, i32) {
    %c0_i32 = arith.constant 0 : i32
    %c0_i32_0 = arith.constant 0 : i32
    %c0_i32_1 = arith.constant 0 : i32
    return %c0_i32, %c0_i32_0 : i32, i32
  }
  func.func @transform_3(%arg0: i32) -> (i32, i32) {
    %c0_i32 = arith.constant 0 : i32
    %c0_i32_0 = arith.constant 0 : i32
    %c0_i32_1 = arith.constant 0 : i32
    return %c0_i32, %c0_i32_0 : i32, i32
  }
  func.func @transform_4(%arg0: i32) -> (i32, i32) {
    %c0_i32 = arith.constant 0 : i32
    %c0_i32_0 = arith.constant 0 : i32
    return %arg0, %c0_i32 : i32, i32
  }
}

</mosaic_0001>

<bundles_post_ra>
// kernel: tpu_custom_call.1
= control target key start
LH: loop header
LB: loop body
LE: loop exit
PB: predicated region body
PF: predicated region fallthrough
CT: control target
= control target key end

     0   :  { %9 = vsyncpa [#allocation3], 0  ;;  %s433_s0 = inlined_call_operand.vmem [shape: s32[24,1], index: 0, kind: input, shape index: {}]   ;;  %s434_s1 = inlined_call_operand.hbm [shape: f32[128,128], index: 1, kind: input, shape index: {}]   ;;  %s435_s2 = inlined_call_operand.vmem [shape: f32[1,128], index: 2, kind: input, shape index: {}]   ;;  %s436_s3 = inlined_call_operand.vmem [shape: f32[1,128], index: 3, kind: input, shape index: {}]   ;;  %s437_s4 = inlined_call_operand.hbm [shape: f32[24,128], index: 4, kind: output, shape index: {}]  }
   0x1   :  { %10 = vsyncpa [#allocation4], 0  ;;  %s17_s17 = sshll.u32 %s434_s1, 4  ;;  %s333_s18 = smov [#allocation2]   ;;  %s18_s17 = int_to_ptr.hbm [resolvable:$true] %s17_s17 }
   0x2   :  { %s19_s19 = sshll.u32 %s333_s18, 4  ;;  %s334_s20 = smov 128   ;;  %s20_s19 = int_to_ptr.vmem [resolvable:$true] %s19_s19 }
   0x3   :  { %s335_s21 = smov 8  }
   0x4   :  { %25 = dma.hbm_to_vmem [thread:$0]  %s18_s17, 2048, %s20_s19, [#allocation3], %s334_s20, %s334_s20, %s335_s21  }
   0x5   :  { %329 = dma.done.wait [#allocation3], 2048  }
   0x6   :  { %330 = vsyncadd [#allocation3], 4294965248  ;;  %v336_v0 = vmov 0   ;;  %v377_v1 = vld [vmem:[%s433_s0 + $0x10] sm:$0xff]  ;;  %v382_v2 = vld [vmem:[%s433_s0 + $0x8] sm:$0xff]  ;;  %v53_v20 = vlaneseq  ;;  %v337_v24 = vmov 1.0  }
   0x7   :  { %269 = vset.pattern.permute.xlu1 %v336_v0  ;;  %268 = vset.pattern.permute.xlu0 %v336_v0  ;;  %v52_v3 = vld [vmem:[#allocation2 + $0x78] sm:$0xff]  ;;  %v51_v4 = vld [vmem:[#allocation2 + $0x70] sm:$0xff]  ;;  %v50_v5 = vld [vmem:[#allocation2 + $0x68] sm:$0xff]  ;;  %vm181_vm4 = vcmp.eq.s32.totalorder %v382_v2, 10  ;;  %v338_v31 = vmov 128.0   ;;  %vm182_vm6 = vcmp.eq.s32.totalorder %v377_v1, 10 }
   0x8   :  { %270 = vset.pattern.permute.xlu2 %v336_v0  ;;  %62 = vperm.xlu0 %268, %v377_v1   ;;  %v49_v6 = vld [vmem:[#allocation2 + $0x60] sm:$0xff]  ;;  %v48_v8 = vld [vmem:[#allocation2 + $0x58] sm:$0xff]  ;;  %v47_v9 = vld [vmem:[#allocation2 + $0x50] sm:$0xff]  ;;  %v54_v21 = vand.u32 127, %v53_v20  ;;  %v184_v30 = vsel %vm181_vm4, 1, %v336_v0  ;;  %273 = vrcp.f32 %v338_v31  ;;  %v185_v50 = vsel %vm182_vm6, 1, %v336_v0 }
   0x9   :  { %59 = vperm.xlu1 %269, %v382_v2   ;;  %229 = vmatpush.msra.mxu1 %v52_v3  ;;  %v389_v7 = vld [vmem:[%s433_s0] sm:$0xff]  ;;  %v46_v10 = vld [vmem:[#allocation2 + $0x48] sm:$0xff]  ;;  %v44_v12 = vld [vmem:[#allocation2 + $0x38] sm:$0xff]  ;;  %s210_s6 = sshll.u32 %s437_s4, 4  ;;  %s211_s6 = int_to_ptr.hbm [resolvable:$true] %s210_s6 }
   0xa   :  { %230 = vmatpush.msra.mxu2 %v52_v3  ;;  %73 = vmatpush.msra.mxu0 %v52_v3  ;;  %v45_v11 = vld [vmem:[#allocation2 + $0x40] sm:$0xff]  ;;  %v43_v13 = vld [vmem:[#allocation2 + $0x30] sm:$0xff]  ;;  %v42_v14 = vld [vmem:[#allocation2 + $0x28] sm:$0xff]  ;;  %vm180_vm3 = vcmp.eq.s32.totalorder %v389_v7, 10 }
   0xb   :  { %231 = vmatpush.msra.mxu1 %v51_v4  ;;  %v41_v15 = vld [vmem:[#allocation2 + $0x20] sm:$0xff]  ;;  %v40_v16 = vld [vmem:[#allocation2 + $0x18] sm:$0xff]  ;;  %v39_v17 = vld [vmem:[#allocation2 + $0x10] sm:$0xff]  ;;  %v183_v29 = vsel %vm180_vm3, 1, %v336_v0 }
   0xc   :  { %232 = vmatpush.msra.mxu2 %v51_v4  ;;  %74 = vmatpush.msra.mxu0 %v51_v4  ;;  %v38_v18 = vld [vmem:[#allocation2 + $0x8] sm:$0xff]  ;;  %v37_v19 = vld [vmem:[#allocation2] sm:$0xff] }
   0xd   :  { %233 = vmatpush.msra.mxu1 %v50_v5 }
   0xe   :  { %234 = vmatpush.msra.mxu2 %v50_v5  ;;  %75 = vmatpush.msra.mxu0 %v50_v5  ;;  %v274_v32 = vpop.eup %273 }
   0xf   :  { %235 = vmatpush.msra.mxu1 %v49_v6  ;;  %v106_v33 = vmul.f32 128.0, %v274_v32  ;;  %vm110_vm5 = vweird.f32 %v274_v32 }
  0x10   :  { %236 = vmatpush.msra.mxu2 %v49_v6  ;;  %56 = vperm.xlu0 %268, %v389_v7  }
  0x11   :  { %76 = vmatpush.msra.mxu0 %v49_v6  ;;  %237 = vmatpush.msra.mxu1 %v48_v8  ;;  %v107_v34 = vsub.f32 1.0, %v106_v33  ;;  %v271_v6 = vld [vmem:[%s435_s2] ss:$0 sm:$0xff]  ;;  %s339_s2 = smov [#allocation5]  }
  0x12   :  { %238 = vmatpush.msra.mxu2 %v48_v8 }
  0x13   :  { %77 = vmatpush.msra.mxu0 %v48_v8  ;;  %239 = vmatpush.msra.mxu1 %v47_v9  ;;  %v108_v35 = vmul.f32 %v274_v32, %v107_v34 }
  0x14   :  { %240 = vmatpush.msra.mxu2 %v47_v9 }
  0x15   :  { %78 = vmatpush.msra.mxu0 %v47_v9  ;;  %241 = vmatpush.msra.mxu1 %v46_v10  ;;  %v109_v36 = vadd.f32 %v274_v32, %v108_v35 }
  0x16   :  { %242 = vmatpush.msra.mxu2 %v46_v10 }
  0x17   :  { %79 = vmatpush.msra.mxu0 %v46_v10  ;;  %243 = vmatpush.msra.mxu1 %v45_v11  ;;  %v111_v37 = vsel %vm110_vm5, %v274_v32, %v109_v36 }
  0x18   :  { %244 = vmatpush.msra.mxu2 %v45_v11 }
  0x19   :  { %80 = vmatpush.msra.mxu0 %v45_v11  ;;  %245 = vmatpush.msra.mxu1 %v44_v12 }
  0x1a   :  { %246 = vmatpush.msra.mxu2 %v44_v12 }
  0x1b   :  { %81 = vmatpush.msra.mxu0 %v44_v12  ;;  %247 = vmatpush.msra.mxu1 %v43_v13  ;;  %v272_v12 = vld [vmem:[%s436_s3] ss:$0 sm:$0xff]  ;;  %s208_s3 = sshll.u32 %s339_s2, 4  ;;  %s209_s3 = int_to_ptr.vmem [resolvable:$true] %s208_s3 }
  0x1c   :  { %248 = vmatpush.msra.mxu2 %v43_v13 }
  0x1d   :  { %82 = vmatpush.msra.mxu0 %v43_v13  ;;  %249 = vmatpush.msra.mxu1 %v42_v14 }
  0x1e   :  { %250 = vmatpush.msra.mxu2 %v42_v14 }
  0x1f   :  { %83 = vmatpush.msra.mxu0 %v42_v14  ;;  %251 = vmatpush.msra.mxu1 %v41_v15 }
  0x20   :  { %252 = vmatpush.msra.mxu2 %v41_v15 }
  0x21   :  { %84 = vmatpush.msra.mxu0 %v41_v15  ;;  %253 = vmatpush.msra.mxu1 %v40_v16 }
  0x22   :  { %254 = vmatpush.msra.mxu2 %v40_v16 }
  0x23   :  { %85 = vmatpush.msra.mxu0 %v40_v16  ;;  %255 = vmatpush.msra.mxu1 %v39_v17 }
  0x24   :  { %256 = vmatpush.msra.mxu2 %v39_v17 }
  0x25   :  { %86 = vmatpush.msra.mxu0 %v39_v17  ;;  %257 = vmatpush.msra.mxu1 %v38_v18 }
  0x26   :  { %258 = vmatpush.msra.mxu2 %v38_v18 }
  0x27   :  { %87 = vmatpush.msra.mxu0 %v38_v18  ;;  %259 = vmatpush.msra.mxu1 %v37_v19 }
  0x28   :  { %260 = vmatpush.msra.mxu2 %v37_v19 }
  0x29   :  { %88 = vmatpush.msra.mxu0 %v37_v19 }
  0x7a   :  { %v63_v22 = vpop.permute.xlu0 %62 }
  0x7b   :  { %v60_v23 = vpop.permute.xlu1 %59  ;;  %vm66_vm0 = vcmp.eq.s32.totalorder %v54_v21, %v63_v22 }
  0x7c   :  { %vm65_vm1 = vcmp.eq.s32.totalorder %v54_v21, %v60_v23  ;;  %228 = vmatmul.msk.f32.vlgmr.msra.gmra.mxu2 %vm66_vm0, %v337_v24 }
  0x7d   :  { %227 = vmatmul.msk.f32.vlgmr.msra.gmra.mxu1 %vm65_vm1, %v337_v24 }
  0x82   :  { %v57_v25 = vpop.permute.xlu0 %56 }
  0x83   :  { %vm64_vm2 = vcmp.eq.s32.totalorder %v54_v21, %v57_v25 }
  0x84   :  { %226 = vmatmul.msk.f32.vlgmr.msra.gmra.mxu0 %vm64_vm2, %v337_v24 }
  0xfa   :  { %v392_v26 = vpop.f32.mrf.mxu1 }
  0xfb   :  { %101 = vadd.xlane.f32.xlu2 %v392_v26 }
  0xff   :  { %v395_v27 = vpop.f32.mrf.mxu2 }
 0x101   :  { %v397_v28 = vpop.f32.mrf.mxu0 }
 0x102   :  { %99 = vadd.xlane.f32.xlu1 %v397_v28 }
 0x103   :  { %103 = vadd.xlane.f32.xlu2 %v395_v27 }
 0x11b   :  { %187 = vperm.xlu2 %270, %v183_v29   ;;  %190 = vperm.xlu1 %269, %v184_v30  }
 0x16e   :  { %v102_v38 = vpop.xlane.xlu2 %101 }
 0x16f   :  { %v113_v39 = vmul.f32 %v111_v37, %v102_v38 }
 0x171   :  { %v116_v40 = vsub.f32 %v392_v26, %v113_v39 }
 0x173   :  { %v119_v41 = vmul.f32 %v116_v40, %v116_v40 }
 0x175   :  { %123 = vadd.xlane.f32.xlu2 %v119_v41  ;;  %v100_v43 = vpop.xlane.xlu1 %99 }
 0x176   :  { %v104_v42 = vpop.xlane.xlu2 %103  ;;  %v112_v45 = vmul.f32 %v111_v37, %v100_v43 }
 0x177   :  { %v114_v44 = vmul.f32 %v111_v37, %v104_v42 }
 0x178   :  { %v115_v47 = vsub.f32 %v397_v28, %v112_v45 }
 0x179   :  { %v407_v46 = vsub.f32 %v395_v27, %v114_v44 }
 0x17a   :  { %v118_v48 = vmul.f32 %v115_v47, %v115_v47 }
 0x17b   :  { %v120_v49 = vmul.f32 %v407_v46, %v407_v46 }
 0x17c   :  { %121 = vadd.xlane.f32.xlu0 %v118_v48 }
 0x17d   :  { %125 = vadd.xlane.f32.xlu2 %v120_v49 }
 0x17e   :  { %v414_v51 = vpop.permute.xlu2 %187 }
 0x17f   :  { %vm195_vm1 = vcmp.eq.s32.totalorder %v414_v51, 1 }
 0x18d   :  { %v191_v14 = vpop.permute.xlu1 %190 }
 0x18e   :  { %vm196_vm12 = vcmp.eq.s32.totalorder %v191_v14, 1 }
 0x195   :  { %193 = vperm.xlu2 %270, %v185_v50  }
 0x1e8   :  { %v124_v52 = vpop.xlane.xlu2 %123 }
 0x1e9   :  { %v128_v53 = vmul.f32 %v124_v52, %v111_v37 }
 0x1eb   :  { %v131_v54 = vadd.f32 1e-05, %v128_v53 }
 0x1ed   :  { %275 = vrsqrt.f32 %v131_v54  ;;  %vm149_vm8 = vweird.f32 %v131_v54 }
 0x1ef   :  { %v122_v55 = vpop.xlane.xlu0 %121 }
 0x1f0   :  { %v126_v56 = vpop.xlane.xlu2 %125  ;;  %v127_v57 = vmul.f32 %v122_v55, %v111_v37 }
 0x1f1   :  { %v129_v58 = vmul.f32 %v126_v56, %v111_v37 }
 0x1f2   :  { %v130_v60 = vadd.f32 1e-05, %v127_v57 }
 0x1f3   :  { %v276_v59 = vpop.eup %275  ;;  %v132_v61 = vadd.f32 1e-05, %v129_v58 }
 0x1f4   :  { %v144_v62 = vmul.f32 %v276_v59, %v131_v54  ;;  %277 = vrsqrt.f32 %v130_v60  ;;  %vm150_vm7 = vweird.f32 %v276_v59  ;;  %vm139_vm13 = vweird.f32 %v130_v60 }
 0x1f5   :  { %279 = vrsqrt.f32 %v132_v61  ;;  %vm151_vm9 = vmor %vm149_vm8, %vm150_vm7  ;;  %vm159_vm15 = vweird.f32 %v132_v61 }
 0x1f6   :  { %v145_v63 = vmul.f32 %v276_v59, %v144_v62 }
 0x1f8   :  { %v146_v1 = vmul.f32 0.5, %v145_v63  ;;  %v194_v32 = vpop.permute.xlu2 %193 }
 0x1f9   :  { %vm197_vm2 = vcmp.eq.s32.totalorder %v194_v32, 1 }
 0x1fa   :  { %v147_v0 = vsub.f32 1.5, %v146_v1  ;;  %v278_v2 = vpop.eup %277 }
 0x1fb   :  { %v280_v3 = vpop.eup %279  ;;  %v134_v5 = vmul.f32 %v278_v2, %v130_v60  ;;  %vm140_vm10 = vweird.f32 %v278_v2 }
 0x1fc   :  { %v148_v4 = vmul.f32 %v276_v59, %v147_v0  ;;  %v154_v7 = vmul.f32 %v280_v3, %v132_v61  ;;  %vm160_vm11 = vweird.f32 %v280_v3  ;;  %vm141_vm14 = vmor %vm139_vm13, %vm140_vm10 }
 0x1fd   :  { %v135_v9 = vmul.f32 %v278_v2, %v134_v5  ;;  %vm161_vm0 = vmor %vm159_vm15, %vm160_vm11 }
 0x1fe   :  { %v152_v8 = vsel %vm151_vm9, %v276_v59, %v148_v4  ;;  %v155_v11 = vmul.f32 %v280_v3, %v154_v7 }
 0x1ff   :  { %v164_v10 = vmul.f32 %v152_v8, %v116_v40  ;;  %v136_v13 = vmul.f32 0.5, %v135_v9 }
 0x200   :  { %v156_v16 = vmul.f32 0.5, %v155_v11 }
 0x201   :  { %v171_v15 = vmul.f32 %v271_v6, %v164_v10  ;;  %v137_v17 = vsub.f32 1.5, %v136_v13 }
 0x202   :  { %v157_v18 = vsub.f32 1.5, %v156_v16 }
 0x203   :  { %v178_v19 = vadd.f32 %v272_v12, %v171_v15  ;;  %v138_v20 = vmul.f32 %v278_v2, %v137_v17 }
 0x204   :  { %v158_v21 = vmul.f32 %v280_v3, %v157_v18 }
 0x205   :  { %v199_v22 = vsel %vm196_vm12, %v392_v26, %v178_v19  ;;  %v142_v23 = vsel %vm141_vm14, %v278_v2, %v138_v20 }
 0x206   :  { %202 = vst [vmem:[#allocation5 + $0x8] sm:$0xff] %v199_v22  ;;  %v163_v24 = vmul.f32 %v142_v23, %v115_v47  ;;  %v162_v25 = vsel %vm161_vm0, %v280_v3, %v158_v21 }
 0x207   :  { %v165_v29 = vmul.f32 %v162_v25, %v407_v46 }
 0x208   :  { %v170_v30 = vmul.f32 %v271_v6, %v163_v24 }
 0x209   :  { %v172_v31 = vmul.f32 %v271_v6, %v165_v29 }
 0x20a   :  { %v177_v33 = vadd.f32 %v272_v12, %v170_v30 }
 0x20b   :  { %v179_v26 = vadd.f32 %v272_v12, %v172_v31 }
 0x20c   :  { %v198_v34 = vsel %vm195_vm1, %v397_v28, %v177_v33 }
 0x20d   :  { %v200_v35 = vsel %vm197_vm2, %v395_v27, %v179_v26  ;;  %201 = vst [vmem:[#allocation5] sm:$0xff] %v198_v34 }
 0x20e   :  { %203 = vst [vmem:[#allocation5 + $0x10] sm:$0xff] %v200_v35 }
 0x20f   :  { %216 = dma.vmem_to_hbm [thread:$0]  %s209_s3, 384, %s211_s6, [#allocation4], %s334_s20, %s334_s20, %s335_s21  }
 0x210   :  { %331 = dma.done.wait [#allocation4], 384  }
 0x211   :  { %332 = vsyncadd [#allocation4], 4294966912 }
 0x212   :  { %221 = vsyncpa [#allocation3], 1 }
 0x213   :  { %222 = vsyncpa [#allocation4], 1 }

</bundles_post_ra>
